<compile_context>
chip_gen: v7x
topology: tpu7x:2x2x1
jax: 0.10.0
libtpu: 0.0.40
codegen_flags: <defaults>
</compile_context>

<pallas_src>
import math

import jax
import jax.numpy as jnp
from jax.experimental import pallas as pl
from jax.experimental.pallas import tpu as pltpu

LANE = 128      # channel dims padded to a multiple of the 128-lane vreg width
SUB = 8         # sublane granularity; row tiles are multiples of this
ROW_TILE = 512  # default rows (output time steps) per block for real shapes


def _round_up(x, m):
    return (x + m - 1) // m * m


def _cdiv(a, b):
    return -(-a // b)


def _gelu_tanh(x):
    # tanh-approx GELU (EUP-friendly).  PyTorch default is exact erf GELU;
    # the difference is <1e-3 and irrelevant here.
    c = math.sqrt(2.0 / math.pi)
    return 0.5 * x * (1.0 + jnp.tanh(c * (x + 0.044715 * x * x * x)))


# ----------------------------------------------------------------------------
# Pallas kernel: conv-as-single-matmul + bias + GELU (+ fused pos-emb add)
# ----------------------------------------------------------------------------
def _make_conv_kernel(taps, add_pos):
    """taps: tuple of (row_shift, chan_start, chan_len) describing how the
    (TR, sum(chan_len)) patch matrix is assembled from the current row block
    plus its 8-row halo.  The patch hits the MXU in a single matmul against
    the pre-concatenated weight."""

    def kernel(*refs):
        if add_pos:
            x_ref, halo_ref, w_ref, b_ref, pos_ref, o_ref = refs
        else:
            x_ref, halo_ref, w_ref, b_ref, o_ref = refs

        cur = x_ref[0]                                   # (TR, Cg)  bf16
        halo = halo_ref[0]                               # (8,  Cg)  bf16
        both = jnp.concatenate([cur, halo], axis=0)      # (TR+8, Cg)

        tr = cur.shape[0]
        parts = []
        for (dr, cs, cn) in taps:                        # static Python unroll
            if dr == 0:
                parts.append(cur[:, cs:cs + cn])
            else:
                parts.append(both[dr:dr + tr, cs:cs + cn])
        patch = parts[0] if len(parts) == 1 else jnp.concatenate(parts, axis=-1)

        acc = jnp.dot(patch, w_ref[...], preferred_element_type=jnp.float32)
        acc = acc + b_ref[...]                           # (1, Cout) f32 bcast
        y = _gelu_tanh(acc)
        if add_pos:
            y = y + pos_ref[...]                         # fused pos-emb add
        o_ref[0] = y.astype(o_ref.dtype)

    return kernel


# ----------------------------------------------------------------------------
# Generic conv stage wrapper
# ----------------------------------------------------------------------------
def _conv_stage(xg, w_cat, bias, taps, t_out, *, pos=None,
                out_dtype=jnp.bfloat16, row_tile=ROW_TILE):
    """xg:    (B, Rg, Cg)  grouped, channel-padded bf16 input; output row t
              consumes xg rows t .. t+max_row_shift (as encoded in `taps`).
       w_cat: (D, Cout_p)  weights concatenated along the contraction dim.
       bias:  (Cout_p,)    f32.
       pos:   optional (t_out, Cout_p) positional embedding fused in epilogue.
    """
    B, rg, cg = xg.shape
    d, cout = w_cat.shape

    tr = _round_up(min(row_tile, _round_up(t_out, SUB)), SUB)
    n_tiles = _cdiv(t_out, tr)

    # Pad rows so the last main block AND its 8-row halo block are in range
    # (keeps every store lane/sublane-dense; no masked partial stores).
    rows_needed = n_tiles * tr + SUB
    xg = jnp.pad(xg, ((0, 0), (0, max(0, rows_needed - rg)), (0, 0)))

    kernel = _make_conv_kernel(taps, pos is not None)
    halo_blocks = tr // SUB  # halo row-block index stride (static Python int)

    in_specs = [
        # current row block
        pl.BlockSpec((1, tr, cg), lambda b, i: (b, i, 0)),
        # 8-row halo: same array through a second spec (no im2col copy in HBM)
        pl.BlockSpec((1, SUB, cg), lambda b, i: (b, (i + 1) * halo_blocks, 0)),
        # weights + bias: constant block index -> resident in VMEM, no re-DMA
        pl.BlockSpec((d, cout), lambda b, i: (0, 0)),
        pl.BlockSpec((1, cout), lambda b, i: (0, 0)),
    ]
    operands = [xg, xg, w_cat.astype(jnp.bfloat16),
                bias.astype(jnp.float32).reshape(1, cout)]

    if pos is not None:
        pos_p = jnp.pad(pos, ((0, n_tiles * tr - pos.shape[0]), (0, 0)))
        in_specs.append(pl.BlockSpec((tr, cout), lambda b, i: (i, 0)))
        operands.append(pos_p.astype(jnp.float32))

    out = pl.pallas_call(
        kernel,
        out_shape=jax.ShapeDtypeStruct((B, n_tiles * tr, cout), out_dtype),
        grid=(B, n_tiles),
        in_specs=in_specs,
        out_specs=pl.BlockSpec((1, tr, cout), lambda b, i: (b, i, 0)),
        compiler_params=pltpu.CompilerParams(
            dimension_semantics=("parallel", "parallel"),
            vmem_limit_bytes=48 * 1024 * 1024,   # headroom under v7x 64 MiB
        ),
    )(*operands)
    return out[:, :t_out, :]


# ----------------------------------------------------------------------------
# The two Whisper-stem convs
# ----------------------------------------------------------------------------
def _conv1_stride1(x_btc, w_oik, b_o, cout_pad):
    """k=3, stride=1, padding=1 conv + GELU.  Returns (B, T, cout_pad) bf16."""
    B, T, c_in = x_btc.shape
    c_out, _, K = w_oik.shape
    cg = _round_up(c_in, LANE)

    # conv padding=1 on time; channel pad to a lane multiple; cast to bf16
    xg = jnp.pad(x_btc, ((0, 0), (1, 1), (0, cg - c_in))).astype(jnp.bfloat16)

    w = jnp.transpose(w_oik, (2, 1, 0))                      # (K, c_in, c_out)
    w = jnp.pad(w, ((0, 0), (0, cg - c_in), (0, cout_pad - c_out)))
    w_cat = w.reshape(K * cg, cout_pad)                      # [tap0; tap1; tap2]
    bias = jnp.pad(b_o, (0, cout_pad - c_out))

    taps = tuple((k, 0, cg) for k in range(K))               # row shifts 0,1,2
    return _conv_stage(xg, w_cat, bias, taps, T, out_dtype=jnp.bfloat16)


def _conv2_stride2(h_btc, w_oik, b_o, pos_tc, cout_pad):
    """k=3, stride=2, padding=1 conv + GELU + fused positional add.
       h_btc: (B, T, Cp) bf16 with channels already padded to Cp."""
    B, T, cp = h_btc.shape
    c_out, c_in, K = w_oik.shape

    xp = jnp.pad(h_btc, ((0, 0), (1, 1), (0, 0)))            # conv padding=1
    tp = T + 2
    if tp % 2 == 1:                                          # even length for pairing
        xp = jnp.pad(xp, ((0, 0), (0, 1), (0, 0)))
        tp += 1
    # pair consecutive time steps into channels: row j = [xp[2j], xp[2j+1]]
    xg = xp.reshape(B, tp // 2, 2 * cp)

    t_out = (T + 2 - K) // 2 + 1

    w = jnp.transpose(w_oik, (2, 1, 0))                      # (K, c_in, c_out)
    w = jnp.pad(w, ((0, 0), (0, cp - c_in), (0, cout_pad - c_out)))
    w_cat = w.reshape(K * cp, cout_pad)                      # [tap0; tap1; tap2]
    bias = jnp.pad(b_o, (0, cout_pad - c_out))

    # patch row t = [ xg[t] = (xp[2t], xp[2t+1]) | first cp chans of xg[t+1] = xp[2t+2] ]
    taps = ((0, 0, 2 * cp), (1, 0, cp))

    pos = jnp.pad(pos_tc[:t_out], ((0, 0), (0, cout_pad - pos_tc.shape[1])))
    return _conv_stage(xg, w_cat, bias, taps, t_out, pos=pos,
                       out_dtype=jnp.float32)


def qwen_audio_encoder_stem(mel_bct, params):
    """mel_bct: (B, n_mels, T) in PyTorch NCW layout.  Returns (B, T//2, d_model)."""
    d_model = params["conv1_w"].shape[0]
    cout_pad = _round_up(d_model, LANE)
    x = jnp.transpose(mel_bct, (0, 2, 1))                    # (B, T, n_mels)
    h = _conv1_stride1(x, params["conv1_w"], params["conv1_b"], cout_pad)
    y = _conv2_stride2(h, params["conv2_w"], params["conv2_b"],
                       params["pos_emb"], cout_pad)
    return y[:, :, :d_model]


def init_params(key, n_mels, d_model, t_ctx):
    k1, k2, k3, k4, k5 = jax.random.split(key, 5)
    return {
        "conv1_w": 0.1 * jax.random.normal(k1, (d_model, n_mels, 3), jnp.float32),
        "conv1_b": 0.1 * jax.random.normal(k2, (d_model,), jnp.float32),
        "conv2_w": 0.1 * jax.random.normal(k3, (d_model, d_model, 3), jnp.float32),
        "conv2_b": 0.1 * jax.random.normal(k4, (d_model,), jnp.float32),
        "pos_emb": 0.1 * jax.random.normal(k5, (t_ctx, d_model), jnp.float32),
    }


# ----------------------------------------------------------------------------
# Pure-JAX reference (bf16-matched) for a sanity check
# ----------------------------------------------------------------------------
def _ref_conv1d_gelu(x_btc, w_oik, b_o, stride, padding):
    x = x_btc.astype(jnp.bfloat16)
    w = w_oik.astype(jnp.bfloat16)
    B, T, c_in = x.shape
    c_out, _, K = w.shape
    t_out = (T + 2 * padding - K) // stride + 1
    xp = jnp.pad(x, ((0, 0), (padding, padding), (0, 0)))
    acc = jnp.zeros((B, t_out, c_out), jnp.float32)
    for k in range(K):
        xs = xp[:, k:k + stride * t_out:stride, :]
        acc = acc + jnp.einsum("bti,oi->bto", xs, w[:, :, k],
                               preferred_element_type=jnp.float32)
    acc = acc + b_o.astype(jnp.float32)
    return _gelu_tanh(acc)


def _ref_stem(mel_bct, params):
    x = jnp.transpose(mel_bct, (0, 2, 1))
    h = _ref_conv1d_gelu(x, params["conv1_w"], params["conv1_b"], 1, 1)
    h = h.astype(jnp.bfloat16)   # kernel keeps the conv1->conv2 tensor in bf16
    y = _ref_conv1d_gelu(h, params["conv2_w"], params["conv2_b"], 2, 1)
    return y + params["pos_emb"][None]


# ----------------------------------------------------------------------------
if __name__ == "__main__":
    B, n_mels, T, d_model = 2, 8, 16, 32
    T2 = T // 2  # stride-2 conv output length

    key = jax.random.PRNGKey(0)
    k_x, k_p = jax.random.split(key)
    mel = jax.random.normal(k_x, (B, n_mels, T), jnp.float32)   # torch NCW input
    params = init_params(k_p, n_mels, d_model, T2)

    out = qwen_audio_encoder_stem(mel, params)
    out = jax.block_until_ready(out)

    ref = _ref_stem(mel, params)
    assert out.shape == (B, T2, d_model), out.shape
    err = float(jnp.max(jnp.abs(out - ref)))
    assert err < 3e-2, err

    print("KERNEL_OK")
</pallas_src>

<mosaic_0001>
module attributes {stable_mosaic.version = 11 : i64} {
  func.func @kernel(%arg0: i32, %arg1: i32, %arg2: memref<1x16x128xbf16, #tpu.memory_space<vmem>>, %arg3: memref<1x8x128xbf16, #tpu.memory_space<vmem>>, %arg4: memref<384x128xbf16, #tpu.memory_space<vmem>>, %arg5: memref<1x128xf32, #tpu.memory_space<vmem>>, %arg6: memref<1x16x128xbf16, #tpu.memory_space<vmem>>) attributes {dimension_semantics = [#tpu.dimension_semantics<parallel>, #tpu.dimension_semantics<parallel>], iteration_bounds = array<i64: 2, 1>, scalar_prefetch = 0 : i64, scratch_operands = 0 : i64, tpu.core_type = #tpu.core_type<tc>, window_params = [{transform_indices = @transform_0, window_bounds = array<i64: 1, 16, 128>}, {transform_indices = @transform_1, window_bounds = array<i64: 1, 8, 128>}, {pipeline_mode = #tpu.pipeline_mode<synchronous>, transform_indices = @transform_2, window_bounds = array<i64: 384, 128>}, {pipeline_mode = #tpu.pipeline_mode<synchronous>, transform_indices = @transform_3, window_bounds = array<i64: 1, 128>}, {transform_indices = @transform_4, window_bounds = array<i64: 1, 16, 128>}]} {
    %c0 = arith.constant 0 : index
    %c0_0 = arith.constant 0 : index
    %c0_1 = arith.constant 0 : index
    %0 = vector.load %arg2[%c0, %c0_0, %c0_1] : memref<1x16x128xbf16, #tpu.memory_space<vmem>>, vector<1x16x128xbf16>
    %1 = vector.shape_cast %0 : vector<1x16x128xbf16> to vector<16x128xbf16>
    %c0_2 = arith.constant 0 : index
    %c0_3 = arith.constant 0 : index
    %c0_4 = arith.constant 0 : index
    %2 = vector.load %arg3[%c0_2, %c0_3, %c0_4] : memref<1x8x128xbf16, #tpu.memory_space<vmem>>, vector<1x8x128xbf16>
    %3 = vector.shape_cast %2 : vector<1x8x128xbf16> to vector<8x128xbf16>
    %4 = tpu.concatenate %1, %3 in 0 : vector<16x128xbf16>, vector<8x128xbf16> -> vector<24x128xbf16>
    %5 = vector.extract_strided_slice %4 {offsets = [1, 0], sizes = [16, 128], strides = [1, 1]} : vector<24x128xbf16> to vector<16x128xbf16>
    %6 = vector.extract_strided_slice %4 {offsets = [2, 0], sizes = [16, 128], strides = [1, 1]} : vector<24x128xbf16> to vector<16x128xbf16>
    %7 = tpu.concatenate %1, %5, %6 in 1 : vector<16x128xbf16>, vector<16x128xbf16>, vector<16x128xbf16> -> vector<16x384xbf16>
    %c0_5 = arith.constant 0 : index
    %c0_6 = arith.constant 0 : index
    %8 = vector.load %arg4[%c0_5, %c0_6] : memref<384x128xbf16, #tpu.memory_space<vmem>>, vector<384x128xbf16>
    %cst = arith.constant dense<0.000000e+00> : vector<16x128xf32>
    %9 = tpu.matmul %7, %8, %cst {dimension_numbers = #tpu.dot_dimension_numbers<[1], [0], [0], [1], [0, 0, 1, 1], [], []>} : vector<16x384xbf16>, vector<384x128xbf16>, vector<16x128xf32> -> vector<16x128xf32>
    %c0_7 = arith.constant 0 : index
    %c0_8 = arith.constant 0 : index
    %10 = vector.load %arg5[%c0_7, %c0_8] : memref<1x128xf32, #tpu.memory_space<vmem>>, vector<1x128xf32>
    %11 = vector.broadcast %10 : vector<1x128xf32> to vector<16x128xf32>
    %12 = arith.addf %9, %11 : vector<16x128xf32>
    %cst_9 = arith.constant 5.000000e-01 : f32
    %13 = vector.broadcast %cst_9 : f32 to vector<16x128xf32>
    %14 = arith.mulf %13, %12 : vector<16x128xf32>
    %cst_10 = arith.constant 4.471500e-02 : f32
    %15 = vector.broadcast %cst_10 : f32 to vector<16x128xf32>
    %16 = arith.mulf %15, %12 : vector<16x128xf32>
    %17 = arith.mulf %16, %12 : vector<16x128xf32>
    %18 = arith.mulf %17, %12 : vector<16x128xf32>
    %19 = arith.addf %12, %18 : vector<16x128xf32>
    %cst_11 = arith.constant 0.797884583 : f32
    %20 = vector.broadcast %cst_11 : f32 to vector<16x128xf32>
    %21 = arith.mulf %20, %19 : vector<16x128xf32>
    %22 = math.tanh %21 : vector<16x128xf32>
    %cst_12 = arith.constant 1.000000e+00 : f32
    %23 = vector.broadcast %cst_12 : f32 to vector<16x128xf32>
    %24 = arith.addf %23, %22 : vector<16x128xf32>
    %25 = arith.mulf %14, %24 : vector<16x128xf32>
    %26 = arith.truncf %25 : vector<16x128xf32> to vector<16x128xbf16>
    %c0_13 = arith.constant 0 : index
    %c0_14 = arith.constant 0 : index
    %c0_15 = arith.constant 0 : index
    %27 = vector.load %arg6[%c0_13, %c0_14, %c0_15] : memref<1x16x128xbf16, #tpu.memory_space<vmem>>, vector<1x16x128xbf16>
    %28 = vector.shape_cast %27 : vector<1x16x128xbf16> to vector<16x128xbf16>
    %29 = vector.shape_cast %26 : vector<16x128xbf16> to vector<1x16x128xbf16>
    tpu.vector_store %arg6[%c0_13, %c0_14, %c0_15], %29 {strides = array<i32>} : memref<1x16x128xbf16, #tpu.memory_space<vmem>>, vector<1x16x128xbf16>,
    return
  }
  func.func @transform_0(%arg0: i32, %arg1: i32) -> (i32, i32, i32) {
    %c0_i32 = arith.constant 0 : i32
    %c0_i32_0 = arith.constant 0 : i32
    return %arg0, %arg1, %c0_i32 : i32, i32, i32
  }
  func.func @transform_1(%arg0: i32, %arg1: i32) -> (i32, i32, i32) {
    %c1_i32 = arith.constant 1 : i32
    %0 = arith.addi %arg1, %c1_i32 : i32
    %c2_i32 = arith.constant 2 : i32
    %1 = arith.muli %0, %c2_i32 : i32
    %c0_i32 = arith.constant 0 : i32
    %c0_i32_0 = arith.constant 0 : i32
    return %arg0, %1, %c0_i32 : i32, i32, i32
  }
  func.func @transform_2(%arg0: i32, %arg1: i32) -> (i32, i32) {
    %c0_i32 = arith.constant 0 : i32
    %c0_i32_0 = arith.constant 0 : i32
    %c0_i32_1 = arith.constant 0 : i32
    return %c0_i32, %c0_i32_0 : i32, i32
  }
  func.func @transform_3(%arg0: i32, %arg1: i32) -> (i32, i32) {
    %c0_i32 = arith.constant 0 : i32
    %c0_i32_0 = arith.constant 0 : i32
    %c0_i32_1 = arith.constant 0 : i32
    return %c0_i32, %c0_i32_0 : i32, i32
  }
  func.func @transform_4(%arg0: i32, %arg1: i32) -> (i32, i32, i32) {
    %c0_i32 = arith.constant 0 : i32
    %c0_i32_0 = arith.constant 0 : i32
    return %arg0, %arg1, %c0_i32 : i32, i32, i32
  }
}

</mosaic_0001>

<bundles_post_ra>
// kernel: tpu_custom_call.1
= control target key start
LH: loop header
LB: loop body
LE: loop exit
PB: predicated region body
PF: predicated region fallthrough
CT: control target
= control target key end

     0   :  { %s1500_s0 = inlined_call_operand.hbm [shape: bf16[2,24,128], index: 0, kind: input, shape index: {}]   ;;  %s1501_s1 = inlined_call_operand.hbm [shape: bf16[2,24,128], index: 1, kind: input, shape index: {}]   ;;  %s1502_s2 = inlined_call_operand.hbm [shape: bf16[384,128], index: 2, kind: input, shape index: {}]   ;;  %s1503_s3 = inlined_call_operand.vmem [shape: f32[1,128], index: 3, kind: input, shape index: {}]   ;;  %s1504_s4 = inlined_call_operand.hbm [shape: bf16[2,16,128], index: 4, kind: output, shape index: {}]  }
   0x1   :  { %1513 = sst [smem:[#allocation16_spill]] %s1500_s0 }
   0x2   :  { %1514 = sst [smem:[#allocation17_spill]] %s1502_s2 }
   0x3   :  { %9 = vsyncpa [#allocation3], 0 }
   0x4   :  { %11 = vsyncpa [#allocation3 + $0x1], 0 }
   0x5   :  { %12 = vsyncpa [#allocation6], 0 }
   0x6   :  { %14 = vsyncpa [#allocation6 + $0x1], 0 }
   0x7   :  { %15 = vsyncpa [#allocation4], 0 }
   0x8   :  { %17 = vsyncpa [#allocation4 + $0x1], 0  ;;  %s1223_s15 = smov 0   ;;  %s1225_s16 = smov 0  }
   0x9   :  { %s1227_s17 = smov 0   ;;  %s1229_s18 = smov 0  }
   0xa   :  { %s1231_s19 = smov 0   ;;  %s1233_s20 = smov 0  }
   0xb LB: > { %1515 = sst [smem:[#allocation13_spill]] %s1174_s17  ;;  %s1254_s21 = sadd.s32 4294967295, %s1186_s20   ;;  %s1186_s20 = sphi %s1233_s20, %s23_s20   ;;  %s1182_s19 = sphi %s1231_s19, %s1543_s19   ;;  %s1178_s18 = sphi %s1229_s18, %s1542_s18   ;;  %s1174_s17 = sphi %s1227_s17, %s1538_s17   ;;  %s1170_s16 = sphi %s1225_s16, %s1541_s16   ;;  %s1166_s15 = sphi %s1223_s15, %s1540_s15  }
   0xc   : > { %s788_s22 = sadd.s32 4294967294, %s1186_s20   ;;  %p57_p0 = scmp.ne.s32.totalorder %s1170_s16, %s1166_s15 }
   0xd   : > { %p1505_p1 = scmp.eq.s32.totalorder %s1254_s21, 0  ;;  %p163_p3 = scmp.eq.s32.totalorder %s788_s22, 1 }
   0xe   : > { %p789_p5 = scmp.ge.s32.totalorder %s1186_s20, 1  ;;  %p170_p7 = scmp.lt.s32.totalorder %s1186_s20, 3 }
   0xf   : > { %p1263_p4 = por %p1505_p1, %p57_p0  ;;  %p1268_p6 = por %p163_p3, %p57_p0 }
  0x10   : > { %p1273_p8 = pnand %p789_p5, %p170_p7  ;;  %s1188_s26 = smov [#allocation7]  }
  0x11   : > { %s1516_s23 = scalar_select %p1263_p4, 1, 0 }
  0x12   : > { %s1517_s24 = scalar_select %p1268_p6, 1, 0 }
  0x13   : > { %s1518_s25 = scalar_select %p1273_p8, 1, 0 }
  0x14   : > { %s182_s27 = sshll.u32 %s1188_s26, 4  ;;  %p904_p9 = pneg %p1273_p8  ;;  %s183_s27 = int_to_ptr.vmem [resolvable:$true] %s182_s27 }
  0x15   : > { %s35_s29 = sadd.s32 1, %s1182_s19  ;;  %s1520_s2 = sld [smem:[#allocation17_spill]] }
  0x16   : > { %p1282_p11 = pnand %p904_p9, %p1505_p1 }
  0x18   : > { %p1009_p13 = pneg %p1282_p11 }
  0x1b   : > { %s1007_s6 = scalar_lea.hbm %s1520_s2, 3072 }
  0x1c   : > { %p1008_p12 = scmp.ne.s32.totalorder %s1520_s2, %s1007_s6  ;;  %p1014_p5 = scmp.lt.u32.totalorder %s1007_s6, %s1520_s2 }
  0x1e   : > { %p1010_p0 = pnand %p1009_p13, %p1008_p12 }
  0x20   : > { %p1011_p3 = pneg %p1010_p0 }
  0x22   : > { %p1016_p7 = pnand %p1014_p5, %p1011_p3 }
  0x24   : > { %1019 = shalt.err (!%p1016_p7)
}
  0x25   : > { %s1020_s11 = scalar_lea.vmem %s183_s27, 3072  ;;  %p1028_p2 = scmp.lt.s32.totalorder %s183_s27, %s183_s27 }
  0x26   : > { %p1021_p9 = scmp.ne.s32.totalorder %s183_s27, %s1020_s11  ;;  %p1029_p6 = scmp.lt.s32.totalorder %s1020_s11, %s1020_s11 }
  0x28   : > { %p1023_p10 = pnand %p1021_p9, %p1009_p13  ;;  %p1030_p4 = por %p1029_p6, %p1028_p2 }
  0x2a   : > { %p1024_p1 = pneg %p1023_p10 }
  0x2c   : > { %p1031_p8 = pnand %p1030_p4, %p1024_p1 }
  0x2e   : > { %1034 = shalt.err (!%p1031_p8)
}
  0x2f   : > { %s1509_s12 = smov 64   ;;  %s1190_s13 = smov 4  }
  0x30   : > { %907 = dma.hbm_to_vmem [thread:$0]  (!%p1282_p11), %s1520_s2, 3072, %s183_s27, [#allocation6], %s1509_s12, %s1509_s12, %s1190_s13  }
  0x31   : > { %p37_p1 = scmp.ge.s32.totalorder %s35_s29, 2  ;;  %s44_s26 = sadd.s32 1, %s1174_s17 }
  0x32   : > { %p51_p2 = scmp.ne.s32.totalorder %s1174_s17, %s1170_s16  ;;  %p52_p4 = scmp.eq.s32.totalorder %s1186_s20, 0 }
  0x33   : > { %s1545_s29 = smov (%p37_p1, %s35_s29), 0  ;;  %p1522_p8 = scmp.eq.s32.totalorder %s1254_s21, 1 }
  0x34   : > { %1521 = sst [smem:[#allocation14_spill]] %s1545_s29  ;;  %p53_p6 = por %p52_p4, %p51_p2 }
  0x35   : > { %p1314_p10 = por %p1522_p8, %p51_p2  ;;  %s39_s30 = ssub.s32 %s1182_s19, %s1545_s29 }
  0x36   : > { %p920_p12 = scmp.lt.s32.totalorder %s1186_s20, 2  ;;  %p42_p13 = scmp.eq.s32.totalorder %s39_s30, 0 }
  0x37   : > { %s1523_s28 = scalar_select %p1314_p10, 1, 0 }
  0x38   : > { %s1322_s5 = sand.u32 1, %s1174_s17   ;;  %s1508_s7 = smul.u32 192, %s1182_s19 }
  0x39   : > { %s792_s27 = sshll.u32 %s1322_s5, 3  ;;  %p1329_p11 = pnand %p920_p12, %p53_p6 }
  0x3a   : > { %s1326_s6 = scalar_select %p42_p13, %s1174_s17, %s44_s26  }
  0x3b   : > { %s203_s8 = scalar_lea.vmem [#allocation2], %s792_s27  ;;  %s1526_s0 = sld [smem:[#allocation16_spill]] }
  0x3c   : > { %1524 = sst [smem:[#allocation15_spill]] %s1326_s6  ;;  %s218_s9 = sshll.u32 %s203_s8, 4  ;;  %s1340_s9 = int_to_ptr.vmem [resolvable:$true] %s218_s9 }
  0x3d   : > { %s200_s30 = scalar_lea.sflag [#allocation3], %s1322_s5  ;;  %p1037_p3 = pneg %p1329_p11 }
  0x41   : > { %s1338_s22 = scalar_lea.hbm %s1526_s0, %s1508_s7  ;;  %s1040_s14 = scalar_lea.hbm %s1526_s0, 384 }
  0x42   : > { %s1035_s27 = scalar_lea.hbm %s1338_s22, 128  ;;  %p1041_p9 = scmp.lt.u32.totalorder %s1338_s22, %s1526_s0 }
  0x43   : > { %p1036_p0 = scmp.ne.s32.totalorder %s1338_s22, %s1035_s27  ;;  %p1042_p1 = scmp.lt.u32.totalorder %s1040_s14, %s1035_s27 }
  0x44   : > { %p1044_p4 = scmp.lt.u32.totalorder %s1035_s27, %s1338_s22 }
  0x45   : > { %p1038_p5 = pnand %p1037_p3, %p1036_p0  ;;  %p1043_p2 = por %p1042_p1, %p1041_p9 }
  0x47   : > { %p1039_p7 = pneg %p1038_p5  ;;  %p1045_p6 = por %p1044_p4, %p1043_p2 }
  0x49   : > { %p1046_p8 = pnand %p1045_p6, %p1039_p7 }
  0x4b   : > { %1049 = shalt.err (!%p1046_p8)
}
  0x4c   : > { %s1050_s26 = scalar_lea.vmem %s1340_s9, 128  ;;  %s1191_s8 = smov [#allocation2]  }
  0x4d   : > { %p1051_p12 = scmp.ne.s32.totalorder %s1340_s9, %s1050_s26  ;;  %s1055_s11 = sshll.u32 %s1191_s8, 4  ;;  %s1056_s11 = int_to_ptr.vmem [resolvable:$false] %s1055_s11 }
  0x4e   : > { %s1057_s12 = scalar_lea.vmem %s1056_s11, 256  ;;  %p1058_p5 = scmp.lt.s32.totalorder %s1340_s9, %s1056_s11 }
  0x4f   : > { %p1053_p13 = pnand %p1051_p12, %p1037_p3  ;;  %p1059_p9 = scmp.lt.s32.totalorder %s1057_s12, %s1050_s26 }
  0x51   : > { %p1054_p0 = pneg %p1053_p13  ;;  %p1060_p1 = por %p1059_p9, %p1058_p5 }
  0x53   : > { %p1061_p2 = pnand %p1060_p1, %p1054_p0 }
  0x55   : > { %1064 = shalt.err (!%p1061_p2)
}
  0x56   : > { %s1527_s7 = smov 64   ;;  %s794_s27 = sshll.u32 %s1322_s5, 2 }
  0x57   : > { %911 = dma.hbm_to_vmem [thread:$0]  (!%p1329_p11), %s1338_s22, 128, %s1340_s9, %s200_s30, %s1527_s7, %s1527_s7, %s1190_s13  }
  0x58   : > { %s1528_s14 = smul.u32 192, %s1182_s19  ;;  %s232_s0 = scalar_lea.vmem [#allocation5], %s794_s27 }
  0x59   : > { %s243_s2 = sshll.u32 %s232_s0, 4  ;;  %s1529_s29 = sand.u32 1, %s1186_s20   ;;  %s244_s2 = int_to_ptr.vmem [resolvable:$true] %s243_s2 }
  0x5a   : > { %s709_s11 = scalar_lea.hbm %s1501_s1, %s1528_s14  ;;  %s229_s6 = scalar_lea.sflag [#allocation6], %s1529_s29 }
  0x5b   : > { %s1380_s12 = scalar_lea.hbm %s709_s11, 128  ;;  %s1095_s17 = scalar_lea.hbm %s709_s11, 192 }
  0x5c   : > { %p1066_p7 = scmp.ne.s32.totalorder %s1380_s12, %s1095_s17  ;;  %s1070_s9 = scalar_lea.hbm %s1501_s1, 384 }
  0x5d   : > { %p1071_p8 = scmp.lt.u32.totalorder %s1380_s12, %s1501_s1  ;;  %p1072_p12 = scmp.lt.u32.totalorder %s1070_s9, %s1095_s17 }
  0x5e   : > { %p1068_p4 = pnand %p1066_p7, %p1037_p3  ;;  %p1074_p0 = scmp.lt.u32.totalorder %s1095_s17, %s1380_s12 }
  0x5f   : > { %p1073_p13 = por %p1072_p12, %p1071_p8 }
  0x60   : > { %p1069_p6 = pneg %p1068_p4 }
  0x61   : > { %p1075_p5 = por %p1074_p0, %p1073_p13 }
  0x63   : > { %p1076_p9 = pnand %p1075_p5, %p1069_p6 }
  0x65   : > { %1079 = shalt.err (!%p1076_p9)
}
  0x66   : > { %s1080_s0 = scalar_lea.vmem %s244_s2, 64  ;;  %s1192_s29 = smov [#allocation5]  }
  0x67   : > { %p1081_p1 = scmp.ne.s32.totalorder %s244_s2, %s1080_s0  ;;  %s1085_s7 = sshll.u32 %s1192_s29, 4  ;;  %s1086_s7 = int_to_ptr.vmem [resolvable:$false] %s1085_s7 }
  0x68   : > { %s1087_s27 = scalar_lea.vmem %s1086_s7, 128  ;;  %p1088_p4 = scmp.lt.s32.totalorder %s244_s2, %s1086_s7 }
  0x69   : > { %p1083_p2 = pnand %p1081_p1, %p1037_p3  ;;  %p1089_p10 = scmp.lt.s32.totalorder %s1087_s27, %s1080_s0 }
  0x6b   : > { %p1084_p7 = pneg %p1083_p2  ;;  %p1090_p8 = por %p1089_p10, %p1088_p4 }
  0x6d   : > { %p1091_p12 = pnand %p1090_p8, %p1084_p7 }
  0x6f   : > { %1094 = shalt.err (!%p1091_p12)
}
  0x70   : > { %914 = dma.hbm_to_vmem [thread:$0]  (!%p1329_p11), %s1380_s12, 64, %s244_s2, %s229_s6  }
  0x71   : > { %p1530_p6 = scmp.ne.s32.totalorder %s1518_s25, 0 }
  0x72   : > { %s1405_s17 = sand.u32 (!%p1530_p6), 1, %s1170_s16   ;;  %p1531_p10 = scmp.ne.s32.totalorder (!%p1530_p6), %s1516_s23, 0 }
  0x73   : > { %252 = sbr.rel (%p1530_p6) target bundleno = 426 (0x1aa), region = 36  ;;  %s797_s14 = sshll.u32 (!%p1530_p6), %s1405_s17, 3 }
  0x74   : > { %s255_s26 = scalar_lea.sflag (!%p1530_p6), [#allocation3], %s1405_s17  ;;  %s1411_s8 = scalar_lea.vmem (!%p1530_p6), [#allocation2], %s797_s14 }
  0x7a   : > { %1149 = dma.done.wait (%p1531_p10), %s255_s26, 128  }
  0x7b   : > { %1151 = vsyncadd (%p1531_p10), %s255_s26, 4294967168  ;;  %s263_s2 = sand.u32 1, %s1254_s21   ;;  %s798_s25 = sshll.u32 %s1405_s17, 2 }
  0x7c   : > { %s264_s6 = scalar_lea.sflag [#allocation6], %s263_s2  ;;  %s1419_s10 = scalar_lea.vmem [#allocation5], %s798_s25 }
  0x7d   : > { %1153 = dma.done.wait (%p1531_p10), %s264_s6, 64  }
  0x7e   : > { %1155 = vsyncadd (%p1531_p10), %s264_s6, 4294967232  ;;  %p1532_p11 = scmp.eq.s32.totalorder %s1254_s21, 0 }
  0x80   : > { %1157 = dma.done.wait (%p1532_p11), [#allocation6], 3072   ;;  %p1533_p3 = pmov %p1532_p11 }
  0x81   : > { %v1193_v0 = vmov 0.0   ;;  %vm1194_vm0 = vmmov 0   ;;  %v978_v1 = vld [vmem:[#allocation7 + $0x40] sm:$0xff]   ;;  %v981_v4 = vld [vmem:[#allocation7 + $0x48] sm:$0xff]   ;;  %v984_v7 = vld [vmem:[#allocation7 + $0x50] sm:$0xff]   ;;  %vm334_vm2 = vcmask 1046528  }
  0x82   : > { %1159 = vsyncadd (%p1533_p3), [#allocation6], 4294964224  ;;  %873 = vmatprep.subr.bf16.mxu1 %v1193_v0  ;;  %889 = vmatprep.mubr.msk.bf16.mxu1 %vm1194_vm0, %v1193_v0  ;;  %v979_v2 = vld [vmem:[#allocation7] sm:$0xff]   ;;  %v982_v5 = vld [vmem:[#allocation7 + $0x8] sm:$0xff]   ;;  %vm319_vm1 = vsmask.f32 7424 }
  0x83   : > { %842 = vmatprep.subr.bf16.mxu0 %v978_v1  ;;  %v980_v3 = vld [vmem:[#allocation7 + $0x80] sm:$0xff]   ;;  %v983_v6 = vld [vmem:[#allocation7 + $0x88] sm:$0xff]   ;;  %v985_v8 = vld [vmem:[#allocation7 + $0x10] sm:$0xff]   ;;  %s836_s11 = sshll.u32 %s1178_s18, 7  ;;  %s300_s12 = scalar_lea.vmem [#allocation8], %s797_s14 }
  0x84   : > { %843 = vmatpush3.bf16.msra.mxu0 %v979_v2  ;;  %874 = vmatpush3.bf16.msra.mxu1 %v980_v3  ;;  %v986_v9 = vld [vmem:[#allocation7 + $0x90] sm:$0xff]   ;;  %v987_v10 = vld [vmem:[#allocation7 + $0x58] sm:$0xff]   ;;  %v990_v13 = vld [vmem:[#allocation7 + $0x60] sm:$0xff]   ;;  %s664_s13 = sshll.u32 %s300_s12, 4  ;;  %s1449_s22 = scalar_lea.hbm %s1504_s4, %s836_s11  ;;  %s1451_s13 = int_to_ptr.vmem [resolvable:$true] %s664_s13 }
  0x85   : > { %844 = vmatprep.subr.bf16.mxu0 %v981_v4  ;;  %875 = vmatprep.subr.bf16.mxu1 %v1193_v0  ;;  %v988_v11 = vld [vmem:[#allocation7 + $0x18] sm:$0xff]   ;;  %v991_v14 = vld [vmem:[#allocation7 + $0x20] sm:$0xff]   ;;  %v993_v16 = vld [vmem:[#allocation7 + $0x68] sm:$0xff]   ;;  %s649_s30 = scalar_lea.sflag [#allocation4], %s1405_s17  ;;  %s1096_s0 = scalar_lea.vmem %s1451_s13, 128 }
  0x86   : > { %v989_v12 = vld [vmem:[#allocation7 + $0x98] sm:$0xff]   ;;  %v992_v15 = vld [vmem:[#allocation7 + $0xa0] sm:$0xff]   ;;  %v994_v17 = vld [vmem:[#allocation7 + $0x28] sm:$0xff]   ;;  %p1097_p13 = scmp.ne.s32.totalorder %s1451_s13, %s1096_s0  ;;  %p1534_p0 = scmp.ne.s32.totalorder %s1523_s28, 0 }
  0x87   : > { %v995_v18 = vld [vmem:[#allocation7 + $0xa8] sm:$0xff]   ;;  %v996_v19 = vld [vmem:[#allocation7 + $0x70] sm:$0xff]   ;;  %v999_v22 = vld [vmem:[#allocation7 + $0x78] sm:$0xff]   ;;  %s1195_s18 = smov [#allocation8]  }
  0x88   : > { %845 = vmatpush3.bf16.msra.mxu0 %v982_v5  ;;  %876 = vmatpush3.bf16.msra.mxu1 %v983_v6  ;;  %v997_v20 = vld [vmem:[#allocation7 + $0x30] sm:$0xff]   ;;  %v312_v23 = vld [vmem:[%s1419_s10] sm:$0xf]  ;;  %v802_v39 = vld [vmem:[%s1503_s3] ss:$0 sm:$0xff]  ;;  %p1098_p5 = pnand %p1097_p13, %p1534_p0  ;;  %s1100_s29 = sshll.u32 %s1195_s18, 4  ;;  %s1101_s29 = int_to_ptr.vmem [resolvable:$false] %s1100_s29 }
  0x89   : > { %846 = vmatprep.subr.bf16.mxu0 %v984_v7  ;;  %877 = vmatprep.subr.bf16.mxu1 %v1193_v0  ;;  %v998_v21 = vld [vmem:[#allocation7 + $0xb0] sm:$0xff]   ;;  %v328_v25 = vshll.u32 %v312_v23, 16  ;;  %v1000_v28 = vld [vmem:[#allocation7 + $0x38] sm:$0xff]   ;;  %v336_v33 = vrot.slane %v312_v23, 1  ;;  %s1102_s7 = scalar_lea.vmem %s1101_s29, 256  ;;  %p1103_p1 = scmp.lt.s32.totalorder %s1451_s13, %s1101_s29 }
  0x8a   : > { %v1001_v24 = vld [vmem:[%s1411_s8] sm:$0xff]   ;;  %v1002_v31 = vld [vmem:[#allocation7 + $0xb8] sm:$0xff]   ;;  %p1099_p9 = pneg %p1098_p5  ;;  %p1104_p2 = scmp.lt.s32.totalorder %s1102_s7, %s1096_s0 }
  0x8b   : > { %v321_v26 = vshrl.u32 %v1001_v24, 16  ;;  %v323_v27 = vshll.u32 %v1001_v24, 16  ;;  %v330_v30 = vrot.slane %v328_v25, 1  ;;  %v335_v32 = vrot.slane %v1001_v24, 1 }
  0x8c   : > { %847 = vmatpush3.bf16.msra.mxu0 %v985_v8  ;;  %878 = vmatpush3.bf16.msra.mxu1 %v986_v9  ;;  %p1105_p7 = por %p1104_p2, %p1103_p1 }
  0x8d   : > { %848 = vmatprep.subr.bf16.mxu0 %v987_v10  ;;  %879 = vmatprep.subr.bf16.mxu1 %v1193_v0  ;;  %v325_v29 = vrot.slane %v323_v27, 1  ;;  %v337_v36 = vsel %vm334_vm2, %v335_v32, %v336_v33 }
  0x8e   : > { %p1106_p4 = pnand %p1105_p7, %p1099_p9 }
  0x8f   : > { %v326_v34 = vor.u32 %v325_v29, %v321_v26 }
  0x90   : > { %849 = vmatpush3.bf16.msra.mxu0 %v988_v11  ;;  %880 = vmatpush3.bf16.msra.mxu1 %v989_v12 }
  0x91   : > { %850 = vmatprep.subr.bf16.mxu0 %v990_v13  ;;  %881 = vmatprep.subr.bf16.mxu1 %v1193_v0  ;;  %v331_v35 = vsel %vm319_vm1, %v326_v34, %v330_v30 }
  0x92   : > { %570 = vmatprep.mubr.bf16.mxu0 %v331_v35 }
  0x94   : > { %851 = vmatpush3.bf16.msra.mxu0 %v991_v14  ;;  %882 = vmatpush3.bf16.msra.mxu1 %v992_v15 }
  0x95   : > { %852 = vmatprep.subr.bf16.mxu0 %v993_v16  ;;  %883 = vmatprep.subr.bf16.mxu1 %v1193_v0 }
  0x98   : > { %853 = vmatpush3.bf16.msra.mxu0 %v994_v17  ;;  %884 = vmatpush3.bf16.msra.mxu1 %v995_v18 }
  0x99   : > { %854 = vmatprep.subr.bf16.mxu0 %v996_v19  ;;  %885 = vmatprep.subr.bf16.mxu1 %v1193_v0 }
  0x9c   : > { %855 = vmatpush3.bf16.msra.mxu0 %v997_v20  ;;  %886 = vmatpush3.bf16.msra.mxu1 %v998_v21 }
  0x9d   : > { %856 = vmatprep.subr.bf16.mxu0 %v999_v22  ;;  %887 = vmatprep.subr.bf16.mxu1 %v1193_v0 }
  0xa0   : > { %857 = vmatpush3.bf16.msra.mxu0 %v1000_v28  ;;  %888 = vmatpush3.bf16.msra.mxu1 %v1002_v31 }
  0xa3   : > { %571 = vmatmul.mubr.bf16.vlgmr.msra.gmra.mrb[0].mxu0 %v1001_v24  ;;  %890 = vmatmul.mubr.bf16.vlgmr.msra.gmra.mrb[0].mxu1 %v337_v36 }
 0x176   : > { %v858_v37 = vpop.f32.mrb[0].mxu0  ;;  %v613_v40 = vpop.f32.mrb[0].mxu1 }
 0x177   : > { %v859_v38 = vpop.f32.mrb[1].mxu0  ;;  %v891_v43 = vpop.f32.mrb[1].mxu1 }
 0x178   : > { %v860_v41 = vadd.f32 %v859_v38, %v858_v37  ;;  %v861_v42 = vpop.f32.mrb[2].mxu0  ;;  %v616_v45 = vpop.f32.mrb[2].mxu1 }
 0x179   : > { %v862_v44 = vpop.f32.mrb[3].mxu0  ;;  %v892_v48 = vpop.f32.mrb[3].mxu1 }
 0x17a   : > { %v573_v46 = vadd.f32 %v860_v41, %v802_v39  ;;  %v863_v47 = vadd.f32 %v862_v44, %v861_v42 }
 0x17c   : > { %v614_v49 = vadd.f32 %v613_v40, %v573_v46  ;;  %v576_v50 = vadd.f32 %v863_v47, %v802_v39 }
 0x17e   : > { %v622_v51 = vmul.f32 0.044715, %v614_v49  ;;  %v617_v52 = vadd.f32 %v616_v45, %v576_v50  ;;  %v620_v1 = vmul.f32 0.5, %v614_v49 }
 0x180   : > { %v624_v53 = vmul.f32 %v622_v51, %v614_v49  ;;  %v623_v54 = vmul.f32 0.044715, %v617_v52  ;;  %v621_v2 = vmul.f32 0.5, %v617_v52 }
 0x182   : > { %v626_v55 = vmul.f32 %v624_v53, %v614_v49  ;;  %v625_v56 = vmul.f32 %v623_v54, %v617_v52 }
 0x184   : > { %v628_v57 = vadd.f32 %v626_v55, %v614_v49  ;;  %v627_v58 = vmul.f32 %v625_v56, %v617_v52 }
 0x186   : > { %v630_v59 = vmul.f32 0.7978846, %v628_v57  ;;  %v629_v60 = vadd.f32 %v627_v58, %v617_v52 }
 0x188   : > { %1003 = vtanh.f32 %v630_v59  ;;  %v631_v61 = vmul.f32 0.7978846, %v629_v60 }
 0x18a   : > { %1005 = vtanh.f32 %v631_v61 }
 0x192   : > { %v1004_v62 = vpop.eup %1003 }
 0x193   : > { %v634_v63 = vadd.f32 1.0, %v1004_v62 }
 0x194   : > { %v1006_v0 = vpop.eup %1005 }
 0x195   : > { %v635_v3 = vadd.f32 1.0, %v1006_v0  ;;  %v636_v4 = vmul.f32 %v634_v63, %v620_v1 }
 0x197   : > { %v637_v5 = vmul.f32 %v635_v3, %v621_v2 }
 0x199   : > { %v840_v6 = vpack.c.bf16 %v637_v5, %v636_v4 }
 0x19b   : > { %841 = vst [vmem:[%s300_s12] sm:$0xff] %v840_v6  }
 0x19c   : > { %1109 = shalt.err (!%p1106_p4)
}
 0x19d   : > { %s1110_s27 = scalar_lea.hbm %s1449_s22, 128  ;;  %s1114_s8 = scalar_lea.hbm %s1504_s4, 256 }
 0x19e   : > { %p1111_p8 = scmp.ne.s32.totalorder %s1449_s22, %s1110_s27  ;;  %p1115_p10 = scmp.lt.u32.totalorder %s1449_s22, %s1504_s4 }
 0x19f   : > { %p1116_p11 = scmp.lt.u32.totalorder %s1114_s8, %s1110_s27  ;;  %p1118_p13 = scmp.lt.u32.totalorder %s1110_s27, %s1449_s22 }
 0x1a0   : > { %p1112_p12 = pnand %p1111_p8, %p1534_p0 }
 0x1a1   : > { %p1117_p3 = por %p1116_p11, %p1115_p10 }
 0x1a2   : > { %p1113_p6 = pneg %p1112_p12 }
 0x1a3   : > { %p1119_p5 = por %p1118_p13, %p1117_p3 }
 0x1a5   : > { %p1120_p9 = pnand %p1119_p5, %p1113_p6 }
 0x1a7   : > { %1123 = shalt.err (!%p1120_p9)
}
 0x1a8   : > { %s1196_s6 = smov 64   ;;  %s1197_s10 = smov 4  }
 0x1a9   : > { %902 = dma.vmem_to_hbm [thread:$0]  (%p1534_p0), %s1451_s13, 128, %s1449_s22, %s649_s30, %s1196_s6, %s1196_s6, %s1197_s10  }
 0x1aa PF: > { %s679_s21 = sand.u32 1, %s1166_s15   ;;  %p1535_p1 = scmp.ne.s32.totalorder %s1517_s24, 0 }
 0x1ab   : > { %p1536_p2 = scmp.ge.s32.totalorder %s1186_s20, 2  ;;  %s680_s23 = scalar_lea.sflag [#allocation4], %s679_s21 }
 0x1ad   : > { %p916_p7 = pnand %p1536_p2, %p1535_p1 }
 0x1af   : > { %1161 = dma.done.wait (!%p916_p7), %s680_s23, 128  }
 0x1b0   : > { %1163 = vsyncadd (!%p916_p7), %s680_s23, 4294967168  ;;  %s23_s20 = sadd.s32 1, %s1186_s20   ;;  %s1537_s11 = sld [smem:[#allocation13_spill]] }
 0x1b1   : > { %p20_p4 = scmp.ge.s32.totalorder %s23_s20, 4   ;;  %s1538_s17 = sld [smem:[#allocation15_spill]] }
 0x1b2   : > { %s1539_s28 = sld [smem:[#allocation14_spill]]  ;;  %s1540_s15 = smov %s1170_s16 }
 0x1b3   : > { %s1542_s18 = smov %s1182_s19  ;;  %22 = sbr.rel (!%p20_p4) target bundleno = 11 (0xb), region = 98 }
 0x1b6   : > { %s1541_s16 = smov %s1537_s11 }
 0x1b8   : > { %s1543_s19 = smov %s1539_s28 }
 0x1ba   :  { %685 = vsyncpa [#allocation3], 1 }
 0x1bb   :  { %687 = vsyncpa [#allocation3 + $0x1], 1 }
 0x1bc   :  { %688 = vsyncpa [#allocation6], 1 }
 0x1bd   :  { %690 = vsyncpa [#allocation6 + $0x1], 1 }
 0x1be   :  { %691 = vsyncpa [#allocation4], 1 }
 0x1bf   :  { %693 = vsyncpa [#allocation4 + $0x1], 1 }

</bundles_post_ra>
